<compile_context>
chip_gen: v6e
topology: v6e:2x2x1
jax: 0.10.0
libtpu: 0.0.40
codegen_flags: <defaults>
</compile_context>

<pallas_src>
import functools

import jax
import jax.numpy as jnp
from jax import lax
from jax.experimental import pallas as pl
from jax.experimental.pallas import tpu as pltpu


def _round_up(v, m):
    return ((v + m - 1) // m) * m


def _cdiv(a, b):
    return (a + b - 1) // b


# Contract dim 1 of lhs with dim 1 of rhs (A @ B^T).  Mosaic lowers this to a
# single MXU matmul with a transposed-rhs feed, so the batch-major x block is
# never explicitly transposed / round-tripped through HBM.
_NT_DIMS = (((1,), (1,)), ((), ()))


def _dense_t(x_t, w, b):
    """y^T = W @ x^T + b via unrolled VPU broadcast-FMAs.

    x_t: (in_f, T)   activations, batch on the 128-wide lane axis
    w:   (out_f, in_f)  PyTorch-layout weight
    b:   (out_f, 1)
    returns (out_f, T) float32
    """
    out_f, in_f = w.shape
    t = x_t.shape[1]
    acc = jnp.broadcast_to(b, (out_f, t))
    for k in range(in_f):                      # 8 / 4 unrolled FMA chains
        acc = acc + w[:, k:k + 1] * x_t[k:k + 1, :]
    return acc


def mlp_kernel(x_ref, w1_ref, b1_ref, w2_ref, b2_ref, w3_ref, b3_ref, o_ref):
    x = x_ref[...]                                            # (T, 10) batch-major
    # Layer 1 on the MXU, consuming x in its native layout:
    #   h1^T[o, n] = sum_k W1[o, k] * x[n, k]
    h1 = lax.dot_general(w1_ref[...], x, _NT_DIMS,
                         preferred_element_type=jnp.float32)  # (8, T)
    h1 = jnp.maximum(h1 + b1_ref[...], 0.0)
    # Layers 2/3 on the VPU in (features, batch) layout.
    h2 = jnp.maximum(_dense_t(h1, w2_ref[...], b2_ref[...]), 0.0)  # (4, T)
    out = _dense_t(h2, w3_ref[...], b3_ref[...])                   # (2, T)
    o_ref[...] = out.astype(o_ref.dtype)                           # lane-dense store


def prepare_params(params):
    """One-time param prep (hoisted out of the per-call path).

    Weights stay in PyTorch (out, in) layout -- both the MXU NT-matmul and the
    transposed VPU dataflow use them as-is.  Biases become (out, 1) columns.
    """
    return {
        "W1": params["W1"], "b1": params["b1"].reshape(-1, 1),
        "W2": params["W2"], "b2": params["b2"].reshape(-1, 1),
        "W3": params["W3"], "b3": params["b3"].reshape(-1, 1),
    }


def net_forward(x, prepared, tile_n=8192):
    """x: (N, 10) float32 (native layout); prepared: prepare_params output.

    Returns (N, 2) float32 matching the PyTorch module's forward.
    """
    x = x.astype(jnp.float32)
    n, f_in = x.shape

    w1, b1 = prepared["W1"], prepared["b1"]    # (8,10), (8,1)
    w2, b2 = prepared["W2"], prepared["b2"]    # (4,8),  (4,1)
    w3, b3 = prepared["W3"], prepared["b3"]    # (2,4),  (2,1)
    assert f_in == w1.shape[1], (f_in, w1.shape)

    # Batch (lane-axis) tile:
    #  * multiple of 128, >= 128 (BlockSpec lane rule, lane-dense stores)
    #  * <= 8192: (tile, 10) input block lane-pads to (tile, 128) in VMEM, so
    #    this keeps double-buffered inputs + body temporaries well inside the
    #    32 MiB default scoped VMEM (v7x: 64 MiB physical)
    #  * <= round_up(ceil(n/2), 128): grid >= 2 steps so v7x's 2 TensorCores
    #    both get work under dimension_semantics=("parallel",)
    #  * <= round_up(n, 128): no pointlessly oversized single block
    tile = max(128, min(_round_up(max(int(tile_n), 1), 128),
                        8192,
                        _round_up(_cdiv(n, 2), 128),
                        _round_up(n, 128)))
    grid = _cdiv(n, tile)          # partial boundary block instead of padding

    n_params = sum(int(p.size) for p in (w1, b1, w2, b2, w3, b3))
    cost = pl.CostEstimate(
        flops=2 * n * (10 * 8 + 8 * 4 + 4 * 2),
        transcendentals=0,
        bytes_accessed=4 * (n * (f_in + 2) + n_params),
    )

    resident = lambda shape: pl.BlockSpec(shape, lambda i: (0, 0))

    out_t = pl.pallas_call(
        mlp_kernel,
        out_shape=jax.ShapeDtypeStruct((2, n), jnp.float32),
        grid=(grid,),
        in_specs=[
            pl.BlockSpec((tile, f_in), lambda i: (i, 0)),     # x tile, native layout
            resident(w1.shape), resident(b1.shape),
            resident(w2.shape), resident(b2.shape),
            resident(w3.shape), resident(b3.shape),
        ],
        out_specs=pl.BlockSpec((2, tile), lambda i: (0, i)),  # lane-dense output
        compiler_params=pltpu.CompilerParams(
            dimension_semantics=("parallel",),
            vmem_limit_bytes=40 * 1024 * 1024),
        cost_estimate=cost,
    )(x, w1, b1, w2, b2, w3, b3)

    # Consumers that can accept the (2, N) slab should use out_t directly; the
    # transpose only restores the nn.Module's (N, 2) return layout.
    return out_t.T


def init_params(key):
    """Deterministic synthetic init matching nn.Linear shapes: (out, in)."""
    ks = jax.random.split(key, 6)

    def lin(kw, kb, out_f, in_f):
        bound = 1.0 / jnp.sqrt(in_f)
        w = jax.random.uniform(kw, (out_f, in_f), jnp.float32, -bound, bound)
        b = jax.random.uniform(kb, (out_f,), jnp.float32, -bound, bound)
        return w, b

    w1, b1 = lin(ks[0], ks[1], 8, 10)
    w2, b2 = lin(ks[2], ks[3], 4, 8)
    w3, b3 = lin(ks[4], ks[5], 2, 4)
    return {"W1": w1, "b1": b1, "W2": w2, "b2": b2, "W3": w3, "b3": b3}


def reference_forward(x, p):
    h1 = jnp.maximum(x @ p["W1"].T + p["b1"], 0.0)
    h2 = jnp.maximum(h1 @ p["W2"].T + p["b2"], 0.0)
    return h2 @ p["W3"].T + p["b3"]


if __name__ == "__main__":
    key = jax.random.PRNGKey(0)
    k_param, k_x1, k_x2 = jax.random.split(key, 3)
    params = init_params(k_param)
    prepared = prepare_params(params)          # hoisted, reused every call

    fwd = jax.jit(functools.partial(net_forward, tile_n=8192))

    # Tolerance: loose enough for MXU f32 pass-decomposition rounding on the
    # layer-1 matmul, tight enough to catch any layout/indexing bug.
    ATOL = RTOL = 1e-3

    # Small batch consistent with the module (batch=8, in_features=10).
    x_small = jax.random.normal(k_x1, (8, 10), jnp.float32)
    out_small = jax.block_until_ready(fwd(x_small, prepared))
    ref_small = reference_forward(x_small, params)
    assert out_small.shape == (8, 2), out_small.shape
    assert jnp.allclose(out_small, ref_small, atol=ATOL, rtol=RTOL), (
        "small-batch mismatch, max |diff| = "
        f"{float(jnp.max(jnp.abs(out_small - ref_small)))}")

    # Larger, non-multiple-of-tile batch: exercises grid=2 + partial last block.
    x_big = jax.random.normal(k_x2, (1000, 10), jnp.float32)
    out_big = jax.block_until_ready(fwd(x_big, prepared))
    ref_big = reference_forward(x_big, params)
    assert out_big.shape == (1000, 2), out_big.shape
    assert jnp.allclose(out_big, ref_big, atol=ATOL, rtol=RTOL), (
        "large-batch mismatch, max |diff| = "
        f"{float(jnp.max(jnp.abs(out_big - ref_big)))}")

    print("KERNEL_OK")
</pallas_src>

<mosaic_0001>
module attributes {stable_mosaic.version = 11 : i64} {
  func.func @mlp_kernel(%arg0: i32, %arg1: memref<128x10xf32, #tpu.memory_space<vmem>>, %arg2: memref<8x10xf32, #tpu.memory_space<vmem>>, %arg3: memref<8x1xf32, #tpu.memory_space<vmem>>, %arg4: memref<4x8xf32, #tpu.memory_space<vmem>>, %arg5: memref<4x1xf32, #tpu.memory_space<vmem>>, %arg6: memref<2x4xf32, #tpu.memory_space<vmem>>, %arg7: memref<2x1xf32, #tpu.memory_space<vmem>>, %arg8: memref<2x128xf32, #tpu.memory_space<vmem>>) attributes {dimension_semantics = [#tpu.dimension_semantics<parallel>], iteration_bounds = array<i64: 1>, scalar_prefetch = 0 : i64, scratch_operands = 0 : i64, tpu.core_type = #tpu.core_type<tc>, window_params = [{transform_indices = @transform_0, window_bounds = array<i64: 128, 10>}, {pipeline_mode = #tpu.pipeline_mode<synchronous>, transform_indices = @transform_1, window_bounds = array<i64: 8, 10>}, {pipeline_mode = #tpu.pipeline_mode<synchronous>, transform_indices = @transform_2, window_bounds = array<i64: 8, 1>}, {pipeline_mode = #tpu.pipeline_mode<synchronous>, transform_indices = @transform_3, window_bounds = array<i64: 4, 8>}, {pipeline_mode = #tpu.pipeline_mode<synchronous>, transform_indices = @transform_4, window_bounds = array<i64: 4, 1>}, {pipeline_mode = #tpu.pipeline_mode<synchronous>, transform_indices = @transform_5, window_bounds = array<i64: 2, 4>}, {pipeline_mode = #tpu.pipeline_mode<synchronous>, transform_indices = @transform_6, window_bounds = array<i64: 2, 1>}, {transform_indices = @transform_7, window_bounds = array<i64: 2, 128>}]} {
    %c0 = arith.constant 0 : index
    %c0_0 = arith.constant 0 : index
    %0 = vector.load %arg1[%c0, %c0_0] : memref<128x10xf32, #tpu.memory_space<vmem>>, vector<128x10xf32>
    %c0_1 = arith.constant 0 : index
    %c0_2 = arith.constant 0 : index
    %1 = vector.load %arg2[%c0_1, %c0_2] : memref<8x10xf32, #tpu.memory_space<vmem>>, vector<8x10xf32>
    %cst = arith.constant dense<0.000000e+00> : vector<8x128xf32>
    %2 = tpu.matmul %1, %0, %cst {dimension_numbers = #tpu.dot_dimension_numbers<[1], [1], [0], [0], [0, 0, 1, 0], [], []>} : vector<8x10xf32>, vector<128x10xf32>, vector<8x128xf32> -> vector<8x128xf32>
    %c0_3 = arith.constant 0 : index
    %c0_4 = arith.constant 0 : index
    %3 = vector.load %arg3[%c0_3, %c0_4] : memref<8x1xf32, #tpu.memory_space<vmem>>, vector<8x1xf32>
    %4 = vector.broadcast %3 : vector<8x1xf32> to vector<8x128xf32>
    %5 = arith.addf %2, %4 : vector<8x128xf32>
    %cst_5 = arith.constant 0.000000e+00 : f32
    %6 = vector.broadcast %cst_5 : f32 to vector<8x128xf32>
    %7 = arith.maximumf %5, %6 : vector<8x128xf32>
    %c0_6 = arith.constant 0 : index
    %c0_7 = arith.constant 0 : index
    %8 = vector.load %arg4[%c0_6, %c0_7] : memref<4x8xf32, #tpu.memory_space<vmem>>, vector<4x8xf32>
    %c0_8 = arith.constant 0 : index
    %c0_9 = arith.constant 0 : index
    %9 = vector.load %arg5[%c0_8, %c0_9] : memref<4x1xf32, #tpu.memory_space<vmem>>, vector<4x1xf32>
    %10 = vector.shape_cast %9 : vector<4x1xf32> to vector<4x1xf32>
    %11 = vector.broadcast %10 : vector<4x1xf32> to vector<4x128xf32>
    %12 = vector.extract_strided_slice %8 {offsets = [0, 0], sizes = [4, 1], strides = [1, 1]} : vector<4x8xf32> to vector<4x1xf32>
    %13 = vector.extract_strided_slice %7 {offsets = [0, 0], sizes = [1, 128], strides = [1, 1]} : vector<8x128xf32> to vector<1x128xf32>
    %14 = vector.broadcast %12 : vector<4x1xf32> to vector<4x128xf32>
    %15 = vector.broadcast %13 : vector<1x128xf32> to vector<4x128xf32>
    %16 = arith.mulf %14, %15 : vector<4x128xf32>
    %17 = arith.addf %11, %16 : vector<4x128xf32>
    %18 = vector.extract_strided_slice %8 {offsets = [0, 1], sizes = [4, 1], strides = [1, 1]} : vector<4x8xf32> to vector<4x1xf32>
    %19 = vector.extract_strided_slice %7 {offsets = [1, 0], sizes = [1, 128], strides = [1, 1]} : vector<8x128xf32> to vector<1x128xf32>
    %20 = vector.broadcast %18 : vector<4x1xf32> to vector<4x128xf32>
    %21 = vector.broadcast %19 : vector<1x128xf32> to vector<4x128xf32>
    %22 = arith.mulf %20, %21 : vector<4x128xf32>
    %23 = arith.addf %17, %22 : vector<4x128xf32>
    %24 = vector.extract_strided_slice %8 {offsets = [0, 2], sizes = [4, 1], strides = [1, 1]} : vector<4x8xf32> to vector<4x1xf32>
    %25 = vector.extract_strided_slice %7 {offsets = [2, 0], sizes = [1, 128], strides = [1, 1]} : vector<8x128xf32> to vector<1x128xf32>
    %26 = vector.broadcast %24 : vector<4x1xf32> to vector<4x128xf32>
    %27 = vector.broadcast %25 : vector<1x128xf32> to vector<4x128xf32>
    %28 = arith.mulf %26, %27 : vector<4x128xf32>
    %29 = arith.addf %23, %28 : vector<4x128xf32>
    %30 = vector.extract_strided_slice %8 {offsets = [0, 3], sizes = [4, 1], strides = [1, 1]} : vector<4x8xf32> to vector<4x1xf32>
    %31 = vector.extract_strided_slice %7 {offsets = [3, 0], sizes = [1, 128], strides = [1, 1]} : vector<8x128xf32> to vector<1x128xf32>
    %32 = vector.broadcast %30 : vector<4x1xf32> to vector<4x128xf32>
    %33 = vector.broadcast %31 : vector<1x128xf32> to vector<4x128xf32>
    %34 = arith.mulf %32, %33 : vector<4x128xf32>
    %35 = arith.addf %29, %34 : vector<4x128xf32>
    %36 = vector.extract_strided_slice %8 {offsets = [0, 4], sizes = [4, 1], strides = [1, 1]} : vector<4x8xf32> to vector<4x1xf32>
    %37 = vector.extract_strided_slice %7 {offsets = [4, 0], sizes = [1, 128], strides = [1, 1]} : vector<8x128xf32> to vector<1x128xf32>
    %38 = vector.broadcast %36 : vector<4x1xf32> to vector<4x128xf32>
    %39 = vector.broadcast %37 : vector<1x128xf32> to vector<4x128xf32>
    %40 = arith.mulf %38, %39 : vector<4x128xf32>
    %41 = arith.addf %35, %40 : vector<4x128xf32>
    %42 = vector.extract_strided_slice %8 {offsets = [0, 5], sizes = [4, 1], strides = [1, 1]} : vector<4x8xf32> to vector<4x1xf32>
    %43 = vector.extract_strided_slice %7 {offsets = [5, 0], sizes = [1, 128], strides = [1, 1]} : vector<8x128xf32> to vector<1x128xf32>
    %44 = vector.broadcast %42 : vector<4x1xf32> to vector<4x128xf32>
    %45 = vector.broadcast %43 : vector<1x128xf32> to vector<4x128xf32>
    %46 = arith.mulf %44, %45 : vector<4x128xf32>
    %47 = arith.addf %41, %46 : vector<4x128xf32>
    %48 = vector.extract_strided_slice %8 {offsets = [0, 6], sizes = [4, 1], strides = [1, 1]} : vector<4x8xf32> to vector<4x1xf32>
    %49 = vector.extract_strided_slice %7 {offsets = [6, 0], sizes = [1, 128], strides = [1, 1]} : vector<8x128xf32> to vector<1x128xf32>
    %50 = vector.broadcast %48 : vector<4x1xf32> to vector<4x128xf32>
    %51 = vector.broadcast %49 : vector<1x128xf32> to vector<4x128xf32>
    %52 = arith.mulf %50, %51 : vector<4x128xf32>
    %53 = arith.addf %47, %52 : vector<4x128xf32>
    %54 = vector.extract_strided_slice %8 {offsets = [0, 7], sizes = [4, 1], strides = [1, 1]} : vector<4x8xf32> to vector<4x1xf32>
    %55 = vector.extract_strided_slice %7 {offsets = [7, 0], sizes = [1, 128], strides = [1, 1]} : vector<8x128xf32> to vector<1x128xf32>
    %56 = vector.broadcast %54 : vector<4x1xf32> to vector<4x128xf32>
    %57 = vector.broadcast %55 : vector<1x128xf32> to vector<4x128xf32>
    %58 = arith.mulf %56, %57 : vector<4x128xf32>
    %59 = arith.addf %53, %58 : vector<4x128xf32>
    %cst_10 = arith.constant 0.000000e+00 : f32
    %60 = vector.broadcast %cst_10 : f32 to vector<4x128xf32>
    %61 = arith.maximumf %59, %60 : vector<4x128xf32>
    %c0_11 = arith.constant 0 : index
    %c0_12 = arith.constant 0 : index
    %62 = vector.load %arg6[%c0_11, %c0_12] : memref<2x4xf32, #tpu.memory_space<vmem>>, vector<2x4xf32>
    %c0_13 = arith.constant 0 : index
    %c0_14 = arith.constant 0 : index
    %63 = vector.load %arg7[%c0_13, %c0_14] : memref<2x1xf32, #tpu.memory_space<vmem>>, vector<2x1xf32>
    %64 = vector.shape_cast %63 : vector<2x1xf32> to vector<2x1xf32>
    %65 = vector.broadcast %64 : vector<2x1xf32> to vector<2x128xf32>
    %66 = vector.extract_strided_slice %62 {offsets = [0, 0], sizes = [2, 1], strides = [1, 1]} : vector<2x4xf32> to vector<2x1xf32>
    %67 = vector.extract_strided_slice %61 {offsets = [0, 0], sizes = [1, 128], strides = [1, 1]} : vector<4x128xf32> to vector<1x128xf32>
    %68 = vector.broadcast %66 : vector<2x1xf32> to vector<2x128xf32>
    %69 = vector.broadcast %67 : vector<1x128xf32> to vector<2x128xf32>
    %70 = arith.mulf %68, %69 : vector<2x128xf32>
    %71 = arith.addf %65, %70 : vector<2x128xf32>
    %72 = vector.extract_strided_slice %62 {offsets = [0, 1], sizes = [2, 1], strides = [1, 1]} : vector<2x4xf32> to vector<2x1xf32>
    %73 = vector.extract_strided_slice %61 {offsets = [1, 0], sizes = [1, 128], strides = [1, 1]} : vector<4x128xf32> to vector<1x128xf32>
    %74 = vector.broadcast %72 : vector<2x1xf32> to vector<2x128xf32>
    %75 = vector.broadcast %73 : vector<1x128xf32> to vector<2x128xf32>
    %76 = arith.mulf %74, %75 : vector<2x128xf32>
    %77 = arith.addf %71, %76 : vector<2x128xf32>
    %78 = vector.extract_strided_slice %62 {offsets = [0, 2], sizes = [2, 1], strides = [1, 1]} : vector<2x4xf32> to vector<2x1xf32>
    %79 = vector.extract_strided_slice %61 {offsets = [2, 0], sizes = [1, 128], strides = [1, 1]} : vector<4x128xf32> to vector<1x128xf32>
    %80 = vector.broadcast %78 : vector<2x1xf32> to vector<2x128xf32>
    %81 = vector.broadcast %79 : vector<1x128xf32> to vector<2x128xf32>
    %82 = arith.mulf %80, %81 : vector<2x128xf32>
    %83 = arith.addf %77, %82 : vector<2x128xf32>
    %84 = vector.extract_strided_slice %62 {offsets = [0, 3], sizes = [2, 1], strides = [1, 1]} : vector<2x4xf32> to vector<2x1xf32>
    %85 = vector.extract_strided_slice %61 {offsets = [3, 0], sizes = [1, 128], strides = [1, 1]} : vector<4x128xf32> to vector<1x128xf32>
    %86 = vector.broadcast %84 : vector<2x1xf32> to vector<2x128xf32>
    %87 = vector.broadcast %85 : vector<1x128xf32> to vector<2x128xf32>
    %88 = arith.mulf %86, %87 : vector<2x128xf32>
    %89 = arith.addf %83, %88 : vector<2x128xf32>
    %c0_15 = arith.constant 0 : index
    %c0_16 = arith.constant 0 : index
    %90 = vector.load %arg8[%c0_15, %c0_16] : memref<2x128xf32, #tpu.memory_space<vmem>>, vector<2x128xf32>
    tpu.vector_store %arg8[%c0_15, %c0_16], %89 {strides = array<i32>} : memref<2x128xf32, #tpu.memory_space<vmem>>, vector<2x128xf32>,
    return
  }
  func.func @transform_0(%arg0: i32) -> (i32, i32) {
    %c0_i32 = arith.constant 0 : i32
    %c0_i32_0 = arith.constant 0 : i32
    return %arg0, %c0_i32 : i32, i32
  }
  func.func @transform_1(%arg0: i32) -> (i32, i32) {
    %c0_i32 = arith.constant 0 : i32
    %c0_i32_0 = arith.constant 0 : i32
    %c0_i32_1 = arith.constant 0 : i32
    return %c0_i32, %c0_i32_0 : i32, i32
  }
  func.func @transform_2(%arg0: i32) -> (i32, i32) {
    %c0_i32 = arith.constant 0 : i32
    %c0_i32_0 = arith.constant 0 : i32
    %c0_i32_1 = arith.constant 0 : i32
    return %c0_i32, %c0_i32_0 : i32, i32
  }
  func.func @transform_3(%arg0: i32) -> (i32, i32) {
    %c0_i32 = arith.constant 0 : i32
    %c0_i32_0 = arith.constant 0 : i32
    %c0_i32_1 = arith.constant 0 : i32
    return %c0_i32, %c0_i32_0 : i32, i32
  }
  func.func @transform_4(%arg0: i32) -> (i32, i32) {
    %c0_i32 = arith.constant 0 : i32
    %c0_i32_0 = arith.constant 0 : i32
    %c0_i32_1 = arith.constant 0 : i32
    return %c0_i32, %c0_i32_0 : i32, i32
  }
  func.func @transform_5(%arg0: i32) -> (i32, i32) {
    %c0_i32 = arith.constant 0 : i32
    %c0_i32_0 = arith.constant 0 : i32
    %c0_i32_1 = arith.constant 0 : i32
    return %c0_i32, %c0_i32_0 : i32, i32
  }
  func.func @transform_6(%arg0: i32) -> (i32, i32) {
    %c0_i32 = arith.constant 0 : i32
    %c0_i32_0 = arith.constant 0 : i32
    %c0_i32_1 = arith.constant 0 : i32
    return %c0_i32, %c0_i32_0 : i32, i32
  }
  func.func @transform_7(%arg0: i32) -> (i32, i32) {
    %c0_i32 = arith.constant 0 : i32
    %c0_i32_0 = arith.constant 0 : i32
    return %c0_i32, %arg0 : i32, i32
  }
}

</mosaic_0001>

<bundles_post_ra>
// kernel: net_forward.1
= control target key start
LH: loop header
LB: loop body
LE: loop exit
PB: predicated region body
PF: predicated region fallthrough
CT: control target
= control target key end

     0   :  { %vm50_vm0 = vcmask 80896   ;;  %v442_v1 = vmov 0.0   ;;  %vm443_vm1 = vmmov 0   ;;  %v444_v2 = vmov 0   ;;  %s596_s0 = inlined_call_operand.vmem [shape: f32[8,10], index: 0, kind: input, shape index: {}]   ;;  %s597_s1 = inlined_call_operand.vmem [shape: f32[8,10], index: 1, kind: input, shape index: {}]   ;;  %s598_s2 = inlined_call_operand.vmem [shape: f32[8,1], index: 2, kind: input, shape index: {}]   ;;  %s599_s3 = inlined_call_operand.vmem [shape: f32[4,8], index: 3, kind: input, shape index: {}]   ;;  %s600_s4 = inlined_call_operand.vmem [shape: f32[4,1], index: 4, kind: input, shape index: {}]   ;;  %s601_s5 = inlined_call_operand.vmem [shape: f32[2,4], index: 5, kind: input, shape index: {}]   ;;  %s602_s6 = inlined_call_operand.vmem [shape: f32[2,1], index: 6, kind: input, shape index: {}]   ;;  %s603_s7 = inlined_call_operand.hbm [shape: f32[2,8], index: 7, kind: output, shape index: {}]  }
   0x1   :  { %v42_v0 = vld [vmem:[%s596_s0 + $0x78] sm:$0xff]  ;;  %359 = vmatprep.subr.mxu0 %v442_v1  ;;  %391 = vmatprep.mubr.msk.f32.mxu0 %vm443_vm1, %v442_v1  ;;  %v41_v3 = vld [vmem:[%s596_s0 + $0x70] sm:$0xff]  ;;  %v174_v4 = vld [vmem:[%s600_s4] sm:$0xf] }
   0x2   :  { %360 = vmatpush3.xpose.msk.msra.mxu0 %vm50_vm0, %v42_v0  ;;  %406 = vset.pattern.permute.xlu1 %v444_v2  ;;  %v44_v5 = vld [vmem:[%s598_s2] sm:$0xff]  ;;  %v40_v6 = vld [vmem:[%s596_s0 + $0x68] sm:$0xff] }
   0x3   :  { %361 = vmatprep.subr.mxu0 %v442_v1  ;;  %405 = vset.pattern.permute.xlu0 %v444_v2 }
   0x4   :  { %177 = vperm.xlu1 %406, %v174_v4   ;;  %47 = vperm.xlu0 %405, %v44_v5  }
   0x6   :  { %362 = vmatpush3.xpose.msk.msra.mxu0 %vm50_vm0, %v41_v3 }
   0x7   :  { %363 = vmatprep.subr.mxu0 %v442_v1 }
   0x8   :  { %12 = vsyncpa [#allocation3], 0  ;;  %v173_v7 = vld [vmem:[%s599_s3] sm:$0xf]  ;;  %v445_v8 = vmov 1   ;;  %v38_v10 = vld [vmem:[%s596_s0 + $0x58] sm:$0xff]  ;;  %v185_v33 = vlaneseq }
   0x9   :  { %407 = vset.pattern.permute.xlu1 %v445_v8  ;;  %v39_v9 = vld [vmem:[%s596_s0 + $0x60] sm:$0xff]  ;;  %182 = vperm.xlu0 %405, %v173_v7   ;;  %v446_v11 = vmov 3   ;;  %v447_v12 = vmov 2   ;;  %v37_v13 = vld [vmem:[%s596_s0 + $0x50] sm:$0xff]  ;;  %v448_v14 = vmov 4   ;;  %v449_v15 = vmov 5  }
   0xa   :  { %364 = vmatpush3.xpose.msk.msra.mxu0 %vm50_vm0, %v40_v6  ;;  %192 = vperm.xlu1 %407, %v173_v7   ;;  %v36_v16 = vld [vmem:[%s596_s0 + $0x48] sm:$0xff]  ;;  %v450_v17 = vmov 6   ;;  %v262_v18 = vld [vmem:[%s601_s5] sm:$0x3]  ;;  %v451_v20 = vmov 7   ;;  %v34_v21 = vld [vmem:[%s596_s0 + $0x38] sm:$0xff] }
   0xb   :  { %365 = vmatprep.subr.mxu0 %v442_v1  ;;  %v35_v19 = vld [vmem:[%s596_s0 + $0x40] sm:$0xff]  ;;  %v33_v23 = vld [vmem:[%s596_s0 + $0x30] sm:$0xff]  ;;  %v32_v24 = vld [vmem:[%s596_s0 + $0x28] sm:$0xff]  ;;  %v186_v35 = vshrl.u32 %v185_v33, 7 }
   0xc   :  { %v263_v22 = vld [vmem:[%s602_s6] sm:$0x3]  ;;  %v30_v26 = vld [vmem:[%s596_s0 + $0x18] sm:$0xff]  ;;  %v29_v27 = vld [vmem:[%s596_s0 + $0x10] sm:$0xff] }
   0xd   :  { %408 = vset.pattern.permute.xlu0 %v447_v12  ;;  %v31_v25 = vld [vmem:[%s596_s0 + $0x20] sm:$0xff]  ;;  %v28_v28 = vld [vmem:[%s596_s0 + $0x8] sm:$0xff]  ;;  %v187_v39 = vsub.s32 0, %v186_v35  ;;  %v197_v40 = vsub.s32 1, %v186_v35  ;;  %v207_v44 = vsub.s32 2, %v186_v35  ;;  %v217_v46 = vsub.s32 3, %v186_v35 }
   0xe   :  { %366 = vmatpush3.xpose.msk.msra.mxu0 %vm50_vm0, %v39_v9  ;;  %409 = vset.pattern.permute.xlu1 %v446_v11  ;;  %v27_v29 = vld [vmem:[%s596_s0] sm:$0xff]  ;;  %v227_v51 = vsub.s32 4, %v186_v35  ;;  %v237_v56 = vsub.s32 5, %v186_v35  ;;  %v247_v58 = vsub.s32 6, %v186_v35  ;;  %v257_v0 = vsub.s32 7, %v186_v35  ;;  %s452_s0 = smov [#allocation2]  }
   0xf   :  { %367 = vmatprep.subr.mxu0 %v442_v1  ;;  %212 = vperm.xlu1 %409, %v173_v7   ;;  %v43_v30 = vld [vmem:[%s597_s1] sm:$0xff]  ;;  %s317_s1 = sshll.u32 %s452_s0, 4  ;;  %s318_s1 = int_to_ptr.vmem [resolvable:$true] %s317_s1 }
  0x10   :  { %202 = vperm.xlu0 %408, %v173_v7   ;;  %s420_s3 = scalar_lea.vmem %s318_s1, 32  ;;  %p425_p1 = scmp.lt.s32.totalorder %s318_s1, %s318_s1 }
  0x11   :  { %p421_p0 = scmp.ne.s32.totalorder %s318_s1, %s420_s3  ;;  %p426_p2 = scmp.lt.s32.totalorder %s420_s3, %s420_s3 }
  0x12   :  { %368 = vmatpush3.xpose.msk.msra.mxu0 %vm50_vm0, %v38_v10 }
  0x13   :  { %369 = vmatprep.subr.mxu0 %v442_v1  ;;  %410 = vset.pattern.permute.xlu1 %v448_v14  ;;  %p427_p3 = por %p426_p2, %p425_p1 }
  0x14   :  { %222 = vperm.xlu1 %410, %v173_v7   ;;  %411 = vset.pattern.permute.xlu0 %v449_v15 }
  0x15   :  { %232 = vperm.xlu0 %411, %v173_v7   ;;  %p428_p4 = pnand %p427_p3, %p421_p0 }
  0x16   :  { %370 = vmatpush3.xpose.msk.msra.mxu0 %vm50_vm0, %v37_v13 }
  0x17   :  { %371 = vmatprep.subr.mxu0 %v442_v1 }
  0x18   :  { %412 = vset.pattern.permute.xlu1 %v450_v17 }
  0x19   :  { %242 = vperm.xlu1 %412, %v173_v7   ;;  %414 = vset.pattern.permute.xlu0 %v444_v2 }
  0x1a   :  { %372 = vmatpush3.xpose.msk.msra.mxu0 %vm50_vm0, %v36_v16  ;;  %271 = vperm.xlu0 %414, %v262_v18  }
  0x1b   :  { %373 = vmatprep.subr.mxu0 %v442_v1 }
  0x1d   :  { %413 = vset.pattern.permute.xlu1 %v451_v20 }
  0x1e   :  { %374 = vmatpush3.xpose.msk.msra.mxu0 %vm50_vm0, %v35_v19  ;;  %252 = vperm.xlu1 %413, %v173_v7  }
  0x1f   :  { %375 = vmatprep.subr.mxu0 %v442_v1  ;;  %417 = vset.pattern.permute.xlu0 %v447_v12 }
  0x20   :  { %291 = vperm.xlu0 %417, %v262_v18  }
  0x22   :  { %376 = vmatpush3.xpose.msk.msra.mxu0 %vm50_vm0, %v34_v21  ;;  %415 = vset.pattern.permute.xlu1 %v444_v2 }
  0x23   :  { %377 = vmatprep.subr.mxu0 %v442_v1  ;;  %266 = vperm.xlu1 %415, %v263_v22  }
  0x24   :  { %419 = vset.pattern.permute.xlu0 %v446_v11 }
  0x26   :  { %378 = vmatpush3.xpose.msk.msra.mxu0 %vm50_vm0, %v33_v23 }
  0x27   :  { %379 = vmatprep.subr.mxu0 %v442_v1  ;;  %416 = vset.pattern.permute.xlu1 %v445_v8 }
  0x28   :  { %281 = vperm.xlu1 %416, %v262_v18  }
  0x2a   :  { %380 = vmatpush3.xpose.msk.msra.mxu0 %vm50_vm0, %v32_v24 }
  0x2b   :  { %381 = vmatprep.subr.mxu0 %v442_v1 }
  0x2c   :  { %418 = vset.pattern.permute.xlu1 %v446_v11 }
  0x2d   :  { %301 = vperm.xlu1 %418, %v262_v18  }
  0x2e   :  { %382 = vmatpush3.xpose.msk.msra.mxu0 %vm50_vm0, %v31_v25 }
  0x2f   :  { %383 = vmatprep.subr.mxu0 %v442_v1 }
  0x32   :  { %384 = vmatpush3.xpose.msk.msra.mxu0 %vm50_vm0, %v30_v26 }
  0x33   :  { %385 = vmatprep.subr.mxu0 %v442_v1 }
  0x36   :  { %386 = vmatpush3.xpose.msk.msra.mxu0 %vm50_vm0, %v29_v27 }
  0x37   :  { %387 = vmatprep.subr.mxu0 %v442_v1 }
  0x3a   :  { %388 = vmatpush3.xpose.msk.msra.mxu0 %vm50_vm0, %v28_v28 }
  0x3b   :  { %389 = vmatprep.subr.mxu0 %v442_v1 }
  0x3e   :  { %390 = vmatpush3.xpose.msk.msra.mxu0 %vm50_vm0, %v27_v29 }
  0x41   :  { %392 = vmatmul.mubr.msk.f32.vlgmr.msra.gmra.mxu0 %vm50_vm0, %v43_v30 }
  0x7f   :  { %v178_v31 = vpop.permute.xlu1 %177  ;;  %v48_v34 = vpop.permute.xlu0 %47 }
  0x84   :  { %v183_v41 = vpop.permute.xlu0 %182 }
  0x85   :  { %v193_v32 = vpop.permute.xlu1 %192 }
  0x8a   :  { %v213_v36 = vpop.permute.xlu1 %212 }
  0x8b   :  { %v203_v52 = vpop.permute.xlu0 %202 }
  0x8f   :  { %v223_v45 = vpop.permute.xlu1 %222 }
  0x90   :  { %v233_v2 = vpop.permute.xlu0 %232 }
  0x94   :  { %v243_v57 = vpop.permute.xlu1 %242 }
  0x95   :  { %v272_v16 = vpop.permute.xlu0 %271 }
  0x99   :  { %v253_v6 = vpop.permute.xlu1 %252 }
  0x9b   :  { %v292_v23 = vpop.permute.xlu0 %291 }
  0x9e   :  { %v267_v12 = vpop.permute.xlu1 %266 }
  0xa3   :  { %v282_v18 = vpop.permute.xlu1 %281 }
  0xa8   :  { %v302_v27 = vpop.permute.xlu1 %301 }
 0x101   :  { %v168_v37 = vpop.f32.mrf.mxu0 }
 0x102   :  { %v169_v38 = vadd.f32 %v168_v37, %v48_v34 }
 0x103   :  { %v393_v42 = vpop.f32.mrf.mxu0 }
 0x104   :  { %v172_v43 = vmax.f32 %v169_v38, 0.0 }
 0x106   :  { %v188_v47 = vrot.slane %v172_v43, %v187_v39  ;;  %v198_v48 = vrot.slane %v172_v43, %v197_v40  ;;  %v208_v50 = vrot.slane %v172_v43, %v207_v44  ;;  %v218_v55 = vrot.slane %v172_v43, %v217_v46 }
 0x107   :  { %v228_v61 = vrot.slane %v172_v43, %v227_v51  ;;  %v238_v1 = vrot.slane %v172_v43, %v237_v56  ;;  %v248_v3 = vrot.slane %v172_v43, %v247_v58  ;;  %v258_v7 = vrot.slane %v172_v43, %v257_v0 }
 0x108   :  { %v189_v49 = vmul.f32 %v188_v47, %v183_v41  ;;  %v199_v54 = vmul.f32 %v198_v48, %v193_v32  ;;  %v209_v60 = vmul.f32 %v208_v50, %v203_v52  ;;  %v219_v63 = vmul.f32 %v218_v55, %v213_v36 }
 0x109   :  { %v229_v5 = vmul.f32 %v228_v61, %v223_v45  ;;  %v239_v9 = vmul.f32 %v238_v1, %v233_v2  ;;  %v249_v10 = vmul.f32 %v248_v3, %v243_v57  ;;  %v259_v13 = vmul.f32 %v258_v7, %v253_v6 }
 0x10a   :  { %v190_v53 = vadd.f32 %v189_v49, %v178_v31 }
 0x10c   :  { %v200_v59 = vadd.f32 %v199_v54, %v190_v53 }
 0x10e   :  { %v210_v62 = vadd.f32 %v209_v60, %v200_v59 }
 0x110   :  { %v220_v4 = vadd.f32 %v219_v63, %v210_v62 }
 0x112   :  { %v230_v8 = vadd.f32 %v229_v5, %v220_v4 }
 0x114   :  { %v240_v11 = vadd.f32 %v239_v9, %v230_v8 }
 0x116   :  { %v250_v14 = vadd.f32 %v249_v10, %v240_v11 }
 0x118   :  { %v260_v15 = vadd.f32 %v259_v13, %v250_v14 }
 0x11a   :  { %v261_v17 = vmax.f32 %v260_v15, 0.0 }
 0x11c   :  { %v287_v19 = vrot.slane %v261_v17, %v197_v40  ;;  %v277_v20 = vrot.slane %v261_v17, %v187_v39  ;;  %v297_v22 = vrot.slane %v261_v17, %v207_v44  ;;  %v307_v26 = vrot.slane %v261_v17, %v217_v46 }
 0x11e   :  { %v278_v21 = vmul.f32 %v277_v20, %v272_v16  ;;  %v288_v24 = vmul.f32 %v287_v19, %v282_v18  ;;  %v298_v29 = vmul.f32 %v297_v22, %v292_v23  ;;  %v308_v30 = vmul.f32 %v307_v26, %v302_v27 }
 0x120   :  { %v279_v25 = vadd.f32 %v278_v21, %v267_v12 }
 0x122   :  { %v289_v28 = vadd.f32 %v288_v24, %v279_v25 }
 0x124   :  { %v299_v31 = vadd.f32 %v298_v29, %v289_v28 }
 0x126   :  { %v309_v32 = vadd.f32 %v308_v30, %v299_v31 }
 0x128   :  { %310 = vst [vmem:[#allocation2] sm:$0x3] %v309_v32 }
 0x129   :  { %431 = shalt.err (!%p428_p4)
}
 0x12a   :  { %320 = dma.vmem_to_hbm [thread:$0]  %s318_s1, 32, %s603_s7, [#allocation3]  }
 0x12b   :  { %440 = dma.done.wait [#allocation3], 32  }
 0x12c   :  { %441 = vsyncadd [#allocation3], 4294967264 }
 0x12d   :  { %324 = vsyncpa [#allocation3], 1 }

</bundles_post_ra>
